<compile_context>
chip_gen: v6e
topology: v6e:2x2x1
jax: 0.10.0
libtpu: 0.0.40
codegen_flags: <defaults>
</compile_context>

<pallas_src>
import functools

import jax
import jax.numpy as jnp
import numpy as np
from jax import lax
from jax.experimental import pallas as pl
from jax.experimental.pallas import tpu as pltpu


def _learned_norm_kernel(x_ref, w1m_ref, w1v_ref, b1_ref, w2_ref, b2_ref, m_ref,
                         o_ref, *, eps, l_valid):
    # x_ref  : (Bt, C, Lp)  input slab (Lp = L padded to a multiple of 128,
    #                        padding is zeros so it does not perturb sums)
    # w1m_ref: (C, H1)      first Linear, mean half   (pre-transposed)
    # w1v_ref: (C, H1)      first Linear, var half    (pre-transposed)
    # b1_ref : (1, H1)
    # w2_ref : (H1, C)      second Linear (pre-transposed)
    # b2_ref : (1, C)
    # m_ref  : (C, C)       symmetric group-averaging matrix
    x = x_ref[...].astype(jnp.float32)                      # (Bt, C, Lp)
    bt = x.shape[0]
    n = jnp.float32(l_valid)

    # --- single-pass per-channel stats over the spatial dim -----------------
    s1 = jnp.sum(x, axis=-1)                                # (Bt, C)
    s2 = jnp.sum(x * x, axis=-1)                            # (Bt, C)
    mean = s1 / n                                           # (Bt, C)
    # unbiased variance (torch .var(), ddof=1) + eps; clamp guards tiny
    # negative values from f32 cancellation on near-constant channels.
    var = jnp.maximum(s2 - s1 * mean, 0.0) / (n - 1.0) + eps  # (Bt, C)

    # --- group mean / var: one fused MXU call on the (C, C) matrix ----------
    stacked = jnp.concatenate([mean, var], axis=0)          # (2*Bt, C)
    g = jnp.dot(stacked, m_ref[...], preferred_element_type=jnp.float32)
    g_mean = g[:bt]                                         # (Bt, C)
    inv_std = lax.rsqrt(g[bt:])                             # (Bt, C)  1/sqrt(g_var)

    # --- tiny MLP bias: layers(cat([mean, tanh(log(var)/5)])) ---------------
    # w1 split into mean/var halves avoids an in-kernel lane concat.
    tvar = jnp.tanh(jnp.log(var) / 5.0)                     # (Bt, C)
    hid = (jnp.dot(mean, w1m_ref[...], preferred_element_type=jnp.float32)
           + jnp.dot(tvar, w1v_ref[...], preferred_element_type=jnp.float32)
           + b1_ref[...])                                   # (Bt, H1)
    hid = jnp.maximum(hid, 0.0)                             # ReLU
    bias = (jnp.dot(hid, w2_ref[...], preferred_element_type=jnp.float32)
            + b2_ref[...])                                  # (Bt, C)

    # --- normalize: subtract group mean, multiply by rsqrt, add bias --------
    o_ref[...] = ((x - g_mean[:, :, None]) * inv_std[:, :, None]
                  + bias[:, :, None]).astype(o_ref.dtype)


def learned_norm_2d(x, w1, b1, w2, b2, *, groups, eps=1e-5):
    """x: (B, C, H, W).  w1: (H1, 2C), b1: (H1,), w2: (C, H1), b2: (C,)."""
    B, C, H, W = x.shape
    assert C % groups == 0
    L = H * W
    assert L > 1, "spatial size of 1 makes the unbiased variance undefined"
    hid = w1.shape[0]
    assert w1.shape == (hid, 2 * C) and w2.shape == (C, hid)

    x_flat = x.reshape(B, C, L)
    # Pad the spatial dim to a lane multiple so output stores are unmasked.
    # Zero padding is exact for the single-pass sum / sum-of-squares stats.
    L_pad = ((L + 127) // 128) * 128
    if L_pad != L:
        x_flat = jnp.pad(x_flat, ((0, 0), (0, 0), (0, L_pad - L)))

    f32 = jnp.float32
    w1_t = jnp.asarray(w1, f32).T                 # (2C, H1)
    w1m = w1_t[:C]                                # (C, H1) mean half
    w1v = w1_t[C:]                                # (C, H1) var half
    b1r = jnp.asarray(b1, f32).reshape(1, hid)
    w2_t = jnp.asarray(w2, f32).T                 # (H1, C)
    b2r = jnp.asarray(b2, f32).reshape(1, C)

    # Symmetric group-averaging matrix M[c, c'] = 1/(C/G) if same group.
    group_of = jnp.arange(C) // (C // groups)
    m = (group_of[:, None] == group_of[None, :]).astype(f32) / (C // groups)

    # Batch tile: largest divisor of B whose slab fits the budget while still
    # leaving >= 2 grid steps (pipeline depth + v7x megacore) when B allows it.
    itemsize = jnp.dtype(x.dtype).itemsize
    slab_budget = 4 * 1024 * 1024                 # ~4x this with I/O double-buffers
    bt = 1
    for cand in range(B, 0, -1):
        if B % cand:
            continue
        if cand * C * L_pad * itemsize > slab_budget:
            continue
        if B >= 2 and B // cand < 2:
            continue
        bt = cand
        break
    grid = (B // bt,)

    kernel = functools.partial(_learned_norm_kernel, eps=eps, l_valid=L)

    out = pl.pallas_call(
        kernel,
        out_shape=jax.ShapeDtypeStruct((B, C, L_pad), x.dtype),
        grid_spec=pltpu.PrefetchScalarGridSpec(
            num_scalar_prefetch=0,
            grid=grid,
            in_specs=[
                pl.BlockSpec((bt, C, L_pad), lambda i: (i, 0, 0)),
                # constant index_maps: fetched once, not re-DMA'd per step
                pl.BlockSpec((C, hid), lambda i: (0, 0)),
                pl.BlockSpec((C, hid), lambda i: (0, 0)),
                pl.BlockSpec((1, hid), lambda i: (0, 0)),
                pl.BlockSpec((hid, C), lambda i: (0, 0)),
                pl.BlockSpec((1, C), lambda i: (0, 0)),
                pl.BlockSpec((C, C), lambda i: (0, 0)),
            ],
            out_specs=pl.BlockSpec((bt, C, L_pad), lambda i: (i, 0, 0)),
        ),
        compiler_params=pltpu.CompilerParams(
            dimension_semantics=("parallel",),
            vmem_limit_bytes=32 * 1024 * 1024,    # explicit; safe on v5e/v6e/v7x
        ),
    )(x_flat, w1m, w1v, b1r, w2_t, b2r, m)

    if L_pad != L:
        out = out[:, :, :L]
    return out.reshape(B, C, H, W)


def _reference(x, w1, b1, w2, b2, *, groups, eps=1e-5):
    """Pure-JAX re-implementation of the PyTorch forward (for verification)."""
    B, C, H, W = x.shape
    xr = x.reshape(B, C, -1).astype(jnp.float32)
    mean = xr.mean(-1)
    var = xr.var(-1, ddof=1) + eps
    stats = jnp.concatenate([mean, jnp.tanh(jnp.log(var) / 5.0)], axis=1)
    h = jnp.maximum(stats @ w1.T + b1, 0.0)
    bias = h @ w2.T + b2
    g_mean = mean.reshape(B, groups, -1).mean(-1, keepdims=True)
    g_std = jnp.sqrt(var.reshape(B, groups, -1).mean(-1, keepdims=True))
    g_in = xr.reshape(B, groups, -1)
    g_norm = (g_in - g_mean) / g_std
    out = g_norm.reshape(B, C, -1) + bias[..., None]
    return out.reshape(x.shape)


if __name__ == "__main__":
    # module config: LearnedNorm2d(num_features=16, groups=4, reduction=8)
    B, C, Hs, Ws = 2, 16, 16, 16
    groups, reduction, eps = 4, 8, 1e-5
    hidden = C // reduction  # 2

    key = jax.random.PRNGKey(0)
    kx, k1, k2, k3, k4 = jax.random.split(key, 5)

    x = jax.random.normal(kx, (B, C, Hs, Ws), dtype=jnp.float32) * 2.0 + 0.5
    # deterministic synthetic Linear parameters (PyTorch orientation: (out, in))
    w1 = jax.random.normal(k1, (hidden, 2 * C), dtype=jnp.float32) * 0.1
    b1 = jax.random.normal(k2, (hidden,), dtype=jnp.float32) * 0.1
    w2 = jax.random.normal(k3, (C, hidden), dtype=jnp.float32) * 0.1
    b2 = jax.random.normal(k4, (C,), dtype=jnp.float32) * 0.1

    out = learned_norm_2d(x, w1, b1, w2, b2, groups=groups, eps=eps)
    out = jax.block_until_ready(out)

    ref = _reference(x, w1, b1, w2, b2, groups=groups, eps=eps)
    np.testing.assert_allclose(np.asarray(out), np.asarray(ref), rtol=1e-3, atol=1e-3)

    print("KERNEL_OK")
</pallas_src>

<mosaic_0001>
module attributes {stable_mosaic.version = 11 : i64} {
  func.func @_learned_norm_kernel(%arg0: i32, %arg1: memref<1x16x256xf32, #tpu.memory_space<vmem>>, %arg2: memref<16x2xf32, #tpu.memory_space<vmem>>, %arg3: memref<16x2xf32, #tpu.memory_space<vmem>>, %arg4: memref<1x2xf32, #tpu.memory_space<vmem>>, %arg5: memref<2x16xf32, #tpu.memory_space<vmem>>, %arg6: memref<1x16xf32, #tpu.memory_space<vmem>>, %arg7: memref<16x16xf32, #tpu.memory_space<vmem>>, %arg8: memref<1x16x256xf32, #tpu.memory_space<vmem>>) attributes {dimension_semantics = [#tpu.dimension_semantics<parallel>], iteration_bounds = array<i64: 2>, scalar_prefetch = 0 : i64, scratch_operands = 0 : i64, tpu.core_type = #tpu.core_type<tc>, window_params = [{transform_indices = @transform_0, window_bounds = array<i64: 1, 16, 256>}, {pipeline_mode = #tpu.pipeline_mode<synchronous>, transform_indices = @transform_1, window_bounds = array<i64: 16, 2>}, {pipeline_mode = #tpu.pipeline_mode<synchronous>, transform_indices = @transform_2, window_bounds = array<i64: 16, 2>}, {pipeline_mode = #tpu.pipeline_mode<synchronous>, transform_indices = @transform_3, window_bounds = array<i64: 1, 2>}, {pipeline_mode = #tpu.pipeline_mode<synchronous>, transform_indices = @transform_4, window_bounds = array<i64: 2, 16>}, {pipeline_mode = #tpu.pipeline_mode<synchronous>, transform_indices = @transform_5, window_bounds = array<i64: 1, 16>}, {pipeline_mode = #tpu.pipeline_mode<synchronous>, transform_indices = @transform_6, window_bounds = array<i64: 16, 16>}, {transform_indices = @transform_7, window_bounds = array<i64: 1, 16, 256>}]} {
    %c0 = arith.constant 0 : index
    %c0_0 = arith.constant 0 : index
    %c0_1 = arith.constant 0 : index
    %0 = vector.load %arg1[%c0, %c0_0, %c0_1] : memref<1x16x256xf32, #tpu.memory_space<vmem>>, vector<1x16x256xf32>
    %cst = arith.constant dense<0.000000e+00> : vector<1x16xf32>
    %1 = vector.multi_reduction <add>, %0, %cst [2] : vector<1x16x256xf32> to vector<1x16xf32>
    %2 = arith.mulf %0, %0 : vector<1x16x256xf32>
    %cst_2 = arith.constant dense<0.000000e+00> : vector<1x16xf32>
    %3 = vector.multi_reduction <add>, %2, %cst_2 [2] : vector<1x16x256xf32> to vector<1x16xf32>
    %cst_3 = arith.constant 2.560000e+02 : f32
    %4 = vector.broadcast %cst_3 : f32 to vector<1x16xf32>
    %5 = arith.divf %1, %4 : vector<1x16xf32>
    %6 = arith.mulf %1, %5 : vector<1x16xf32>
    %7 = arith.subf %3, %6 : vector<1x16xf32>
    %cst_4 = arith.constant 0.000000e+00 : f32
    %8 = vector.broadcast %cst_4 : f32 to vector<1x16xf32>
    %9 = arith.maximumf %7, %8 : vector<1x16xf32>
    %cst_5 = arith.constant 2.560000e+02 : f32
    %cst_6 = arith.constant 1.000000e+00 : f32
    %10 = arith.subf %cst_5, %cst_6 : f32
    %11 = vector.broadcast %10 : f32 to vector<1x16xf32>
    %12 = arith.divf %9, %11 : vector<1x16xf32>
    %cst_7 = arith.constant 9.99999974E-6 : f32
    %13 = vector.broadcast %cst_7 : f32 to vector<1x16xf32>
    %14 = arith.addf %12, %13 : vector<1x16xf32>
    %15 = tpu.concatenate %5, %14 in 0 : vector<1x16xf32>, vector<1x16xf32> -> vector<2x16xf32>
    %c0_8 = arith.constant 0 : index
    %c0_9 = arith.constant 0 : index
    %16 = vector.load %arg7[%c0_8, %c0_9] : memref<16x16xf32, #tpu.memory_space<vmem>>, vector<16x16xf32>
    %cst_10 = arith.constant dense<0.000000e+00> : vector<2x16xf32>
    %17 = tpu.matmul %15, %16, %cst_10 {dimension_numbers = #tpu.dot_dimension_numbers<[1], [0], [0], [1], [0, 0, 1, 1], [], []>} : vector<2x16xf32>, vector<16x16xf32>, vector<2x16xf32> -> vector<2x16xf32>
    %18 = vector.extract_strided_slice %17 {offsets = [0, 0], sizes = [1, 16], strides = [1, 1]} : vector<2x16xf32> to vector<1x16xf32>
    %19 = vector.extract_strided_slice %17 {offsets = [1, 0], sizes = [1, 16], strides = [1, 1]} : vector<2x16xf32> to vector<1x16xf32>
    %20 = math.rsqrt %19 : vector<1x16xf32>
    %21 = math.log %14 : vector<1x16xf32>
    %cst_11 = arith.constant 5.000000e+00 : f32
    %22 = vector.broadcast %cst_11 : f32 to vector<1x16xf32>
    %23 = arith.divf %21, %22 : vector<1x16xf32>
    %24 = math.tanh %23 : vector<1x16xf32>
    %c0_12 = arith.constant 0 : index
    %c0_13 = arith.constant 0 : index
    %25 = vector.load %arg2[%c0_12, %c0_13] : memref<16x2xf32, #tpu.memory_space<vmem>>, vector<16x2xf32>
    %cst_14 = arith.constant dense<0.000000e+00> : vector<1x2xf32>
    %26 = tpu.matmul %5, %25, %cst_14 {dimension_numbers = #tpu.dot_dimension_numbers<[1], [0], [0], [1], [0, 0, 1, 1], [], []>} : vector<1x16xf32>, vector<16x2xf32>, vector<1x2xf32> -> vector<1x2xf32>
    %c0_15 = arith.constant 0 : index
    %c0_16 = arith.constant 0 : index
    %27 = vector.load %arg3[%c0_15, %c0_16] : memref<16x2xf32, #tpu.memory_space<vmem>>, vector<16x2xf32>
    %cst_17 = arith.constant dense<0.000000e+00> : vector<1x2xf32>
    %28 = tpu.matmul %24, %27, %cst_17 {dimension_numbers = #tpu.dot_dimension_numbers<[1], [0], [0], [1], [0, 0, 1, 1], [], []>} : vector<1x16xf32>, vector<16x2xf32>, vector<1x2xf32> -> vector<1x2xf32>
    %29 = arith.addf %26, %28 : vector<1x2xf32>
    %c0_18 = arith.constant 0 : index
    %c0_19 = arith.constant 0 : index
    %30 = vector.load %arg4[%c0_18, %c0_19] : memref<1x2xf32, #tpu.memory_space<vmem>>, vector<1x2xf32>
    %31 = arith.addf %29, %30 : vector<1x2xf32>
    %cst_20 = arith.constant 0.000000e+00 : f32
    %32 = vector.broadcast %cst_20 : f32 to vector<1x2xf32>
    %33 = arith.maximumf %31, %32 : vector<1x2xf32>
    %c0_21 = arith.constant 0 : index
    %c0_22 = arith.constant 0 : index
    %34 = vector.load %arg5[%c0_21, %c0_22] : memref<2x16xf32, #tpu.memory_space<vmem>>, vector<2x16xf32>
    %cst_23 = arith.constant dense<0.000000e+00> : vector<1x16xf32>
    %35 = tpu.matmul %33, %34, %cst_23 {dimension_numbers = #tpu.dot_dimension_numbers<[1], [0], [0], [1], [0, 0, 1, 1], [], []>} : vector<1x2xf32>, vector<2x16xf32>, vector<1x16xf32> -> vector<1x16xf32>
    %c0_24 = arith.constant 0 : index
    %c0_25 = arith.constant 0 : index
    %36 = vector.load %arg6[%c0_24, %c0_25] : memref<1x16xf32, #tpu.memory_space<vmem>>, vector<1x16xf32>
    %37 = arith.addf %35, %36 : vector<1x16xf32>
    %38 = vector.shape_cast %18 : vector<1x16xf32> to vector<1x16x1xf32>
    %39 = vector.broadcast %38 : vector<1x16x1xf32> to vector<1x16x256xf32>
    %40 = arith.subf %0, %39 : vector<1x16x256xf32>
    %41 = vector.shape_cast %20 : vector<1x16xf32> to vector<1x16x1xf32>
    %42 = vector.broadcast %41 : vector<1x16x1xf32> to vector<1x16x256xf32>
    %43 = arith.mulf %40, %42 : vector<1x16x256xf32>
    %44 = vector.shape_cast %37 : vector<1x16xf32> to vector<1x16x1xf32>
    %45 = vector.broadcast %44 : vector<1x16x1xf32> to vector<1x16x256xf32>
    %46 = arith.addf %43, %45 : vector<1x16x256xf32>
    %c0_26 = arith.constant 0 : index
    %c0_27 = arith.constant 0 : index
    %c0_28 = arith.constant 0 : index
    %47 = vector.load %arg8[%c0_26, %c0_27, %c0_28] : memref<1x16x256xf32, #tpu.memory_space<vmem>>, vector<1x16x256xf32>
    tpu.vector_store %arg8[%c0_26, %c0_27, %c0_28], %46 {strides = array<i32>} : memref<1x16x256xf32, #tpu.memory_space<vmem>>, vector<1x16x256xf32>,
    return
  }
  func.func @transform_0(%arg0: i32) -> (i32, i32, i32) {
    %c0_i32 = arith.constant 0 : i32
    %c0_i32_0 = arith.constant 0 : i32
    %c0_i32_1 = arith.constant 0 : i32
    return %arg0, %c0_i32, %c0_i32_0 : i32, i32, i32
  }
  func.func @transform_1(%arg0: i32) -> (i32, i32) {
    %c0_i32 = arith.constant 0 : i32
    %c0_i32_0 = arith.constant 0 : i32
    %c0_i32_1 = arith.constant 0 : i32
    return %c0_i32, %c0_i32_0 : i32, i32
  }
  func.func @transform_2(%arg0: i32) -> (i32, i32) {
    %c0_i32 = arith.constant 0 : i32
    %c0_i32_0 = arith.constant 0 : i32
    %c0_i32_1 = arith.constant 0 : i32
    return %c0_i32, %c0_i32_0 : i32, i32
  }
  func.func @transform_3(%arg0: i32) -> (i32, i32) {
    %c0_i32 = arith.constant 0 : i32
    %c0_i32_0 = arith.constant 0 : i32
    %c0_i32_1 = arith.constant 0 : i32
    return %c0_i32, %c0_i32_0 : i32, i32
  }
  func.func @transform_4(%arg0: i32) -> (i32, i32) {
    %c0_i32 = arith.constant 0 : i32
    %c0_i32_0 = arith.constant 0 : i32
    %c0_i32_1 = arith.constant 0 : i32
    return %c0_i32, %c0_i32_0 : i32, i32
  }
  func.func @transform_5(%arg0: i32) -> (i32, i32) {
    %c0_i32 = arith.constant 0 : i32
    %c0_i32_0 = arith.constant 0 : i32
    %c0_i32_1 = arith.constant 0 : i32
    return %c0_i32, %c0_i32_0 : i32, i32
  }
  func.func @transform_6(%arg0: i32) -> (i32, i32) {
    %c0_i32 = arith.constant 0 : i32
    %c0_i32_0 = arith.constant 0 : i32
    %c0_i32_1 = arith.constant 0 : i32
    return %c0_i32, %c0_i32_0 : i32, i32
  }
  func.func @transform_7(%arg0: i32) -> (i32, i32, i32) {
    %c0_i32 = arith.constant 0 : i32
    %c0_i32_0 = arith.constant 0 : i32
    %c0_i32_1 = arith.constant 0 : i32
    return %arg0, %c0_i32, %c0_i32_0 : i32, i32, i32
  }
}

</mosaic_0001>

<bundles_post_ra>
// kernel: tpu_custom_call.1
= control target key start
LH: loop header
LB: loop body
LE: loop exit
PB: predicated region body
PF: predicated region fallthrough
CT: control target
= control target key end

     0   :  { %12 = vsyncpa [#allocation3], 0  ;;  %s1323_s0 = inlined_call_operand.hbm [shape: f32[2,16,256], index: 0, kind: input, shape index: {}]   ;;  %s1324_s1 = inlined_call_operand.vmem [shape: f32[16,2], index: 1, kind: input, shape index: {}]   ;;  %s1325_s2 = inlined_call_operand.vmem [shape: f32[16,2], index: 2, kind: input, shape index: {}]   ;;  %s1326_s3 = inlined_call_operand.vmem [shape: f32[1,2], index: 3, kind: input, shape index: {}]   ;;  %s1327_s4 = inlined_call_operand.vmem [shape: f32[2,16], index: 4, kind: input, shape index: {}]   ;;  %s1328_s5 = inlined_call_operand.vmem [shape: f32[1,16], index: 5, kind: input, shape index: {}]   ;;  %s1329_s6 = inlined_call_operand.vmem [shape: f32[16,16], index: 6, kind: input, shape index: {}]   ;;  %s1330_s7 = inlined_call_operand.hbm [shape: f32[2,16,256], index: 7, kind: output, shape index: {}]  }
   0x1   :  { %14 = vsyncpa [#allocation3 + $0x1], 0 }
   0x2   :  { %15 = vsyncpa [#allocation4], 0 }
   0x3   :  { %17 = vsyncpa [#allocation4 + $0x1], 0  ;;  %s1087_s24 = smov 0   ;;  %s1089_s25 = smov 0  }
   0x4   :  { %s1091_s26 = smov 0   ;;  %s1093_s27 = smov 0  }
   0x5 LB: > { %s1108_s28 = sadd.s32 4294967295, %s1037_s27   ;;  %s825_s29 = sadd.s32 4294967294, %s1037_s27   ;;  %s1037_s27 = sphi %s1093_s27, %s1345_s27   ;;  %s1033_s26 = sphi %s1091_s26, %s1344_s26   ;;  %s1029_s25 = sphi %s1089_s25, %s1343_s25   ;;  %s1025_s24 = sphi %s1087_s24, %s1342_s24  }
   0x6   : > { %s1112_s30 = sadd.s32 1, %s1037_s27   ;;  %s30_s8 = sadd.s32 1, %s1033_s26 }
   0x7   : > { %s27_s9 = ssub.s32 %s1037_s27, %s1112_s30  ;;  %p37_p0 = scmp.ne.s32.totalorder %s1033_s26, %s1029_s25 }
   0x8   : > { %p28_p1 = scmp.eq.s32.totalorder %s27_s9, 0  ;;  %p38_p2 = scmp.eq.s32.totalorder %s1037_s27, 0 }
   0x9   : > { %p43_p3 = scmp.ne.s32.totalorder %s1029_s25, %s1025_s24  ;;  %p44_p4 = scmp.eq.s32.totalorder %s1108_s28, 0 }
   0xa   : > { %s1124_s10 = scalar_select %p28_p1, %s1033_s26, %s30_s8  }
   0xb   : > { %p1126_p5 = por %p38_p2, %p37_p0  ;;  %p1130_p6 = por %p44_p4, %p43_p3 }
   0xc   : > { %p193_p7 = scmp.eq.s32.totalorder %s1108_s28, 1  ;;  %p199_p8 = scmp.eq.s32.totalorder %s825_s29, 1 }
   0xd   : > { %s1334_s12 = scalar_select %p1130_p6, 1, 0 }
   0xe   : > { %p895_p10 = scmp.lt.s32.totalorder %s1037_s27, 2  ;;  %p1137_p11 = por %p193_p7, %p37_p0 }
   0xf   : > { %p1141_p12 = por %p199_p8, %p43_p3  ;;  %s237_s15 = sand.u32 1, %s1033_s26  }
  0x10   : > { %s1335_s13 = scalar_select %p1137_p11, 1, 0 }
  0x11   : > { %s1336_s14 = scalar_select %p1141_p12, 1, 0 }
  0x12   : > { %s844_s16 = sshll.u32 %s1037_s27, 9  ;;  %s828_s17 = sshll.u32 %s237_s15, 5 }
  0x13   : > { %s1150_s20 = scalar_lea.hbm %s1323_s0, %s844_s16  ;;  %s241_s21 = scalar_lea.vmem [#allocation2], %s828_s17 }
  0x14   : > { %s248_s22 = sshll.u32 %s241_s21, 4  ;;  %p1154_p13 = pnand %p895_p10, %p1126_p5  ;;  %s1158_s22 = int_to_ptr.vmem [resolvable:$true] %s248_s22 }
  0x15   : > { %s1160_s29 = scalar_lea.sflag [#allocation3], %s237_s15  ;;  %s945_s8 = scalar_lea.hbm %s1150_s20, 512 }
  0x16   : > { %p946_p0 = scmp.ne.s32.totalorder %s1150_s20, %s945_s8  ;;  %p947_p1 = pneg %p1154_p13 }
  0x17   : > { %s950_s17 = scalar_lea.hbm %s1323_s0, 1024  ;;  %p951_p4 = scmp.lt.s32.totalorder %s1150_s20, %s1323_s0 }
  0x18   : > { %p948_p2 = pnand %p947_p1, %p946_p0  ;;  %p952_p5 = scmp.lt.s32.totalorder %s950_s17, %s945_s8 }
  0x1a   : > { %p949_p3 = pneg %p948_p2  ;;  %p953_p7 = por %p952_p5, %p951_p4 }
  0x1c   : > { %p954_p8 = pnand %p953_p7, %p949_p3 }
  0x1e   : > { %957 = shalt.err (!%p954_p8)
}
  0x1f   : > { %s958_s15 = scalar_lea.vmem %s1158_s22, 512  ;;  %s1039_s19 = smov [#allocation2]  }
  0x20   : > { %p959_p10 = scmp.ne.s32.totalorder %s1158_s22, %s958_s15  ;;  %s963_s21 = sshll.u32 %s1039_s19, 4  ;;  %s964_s21 = int_to_ptr.vmem [resolvable:$false] %s963_s21 }
  0x21   : > { %s965_s9 = scalar_lea.vmem %s964_s21, 1024  ;;  %p966_p2 = scmp.lt.s32.totalorder %s1158_s22, %s964_s21 }
  0x22   : > { %p961_p9 = pnand %p959_p10, %p947_p1  ;;  %p967_p12 = scmp.lt.s32.totalorder %s965_s9, %s958_s15 }
  0x24   : > { %p962_p0 = pneg %p961_p9  ;;  %p968_p11 = por %p967_p12, %p966_p2 }
  0x26   : > { %p969_p6 = pnand %p968_p11, %p962_p0 }
  0x28   : > { %972 = shalt.err (!%p969_p6)
}
  0x29   : > { %s1040_s8 = smov 256   ;;  %s1041_s16 = smov 16  }
  0x2a   : > { %890 = dma.hbm_to_vmem [thread:$0]  (!%p1154_p13), %s1150_s20, 512, %s1158_s22, %s1160_s29, %s1040_s8, %s1040_s8, %s1041_s16  }
  0x2b   : > { %p831_p9 = scmp.ge.s32.totalorder %s1037_s27, 1  ;;  %p256_p1 = scmp.lt.s32.totalorder %s1037_s27, 3 }
  0x2d   : > { %p257_p3 = pnand %p831_p9, %p256_p1 }
  0x2e   : > { %s1184_s17 = sand.u32 (!%p257_p3), 1, %s1029_s25   ;;  %p1338_p6 = scmp.ne.s32.totalorder (!%p257_p3), %s1334_s12, 0 }
  0x2f   : > { %260 = sbr.rel (%p257_p3) target bundleno = 773 (0x305), region = 48  ;;  %s832_s11 = sshll.u32 (!%p257_p3), %s1184_s17, 5 }
  0x30   : > { %s263_s18 = scalar_lea.sflag (!%p257_p3), [#allocation3], %s1184_s17  ;;  %s266_s15 = scalar_lea.vmem (!%p257_p3), [#allocation2], %s832_s11 }
  0x34   : > { %1016 = dma.done.wait (%p1338_p6), %s263_s18, 512  }
  0x35   : > { %1018 = vsyncadd (%p1338_p6), %s263_s18, 4294966784  ;;  %v1194_v0 = vld [vmem:[%s266_s15] sm:$0xff]  ;;  %v1196_v1 = vld [vmem:[%s266_s15 + $0x8] sm:$0xff]  ;;  %v1042_v12 = vmov 0.0   ;;  %vm1043_vm0 = vmmov 0   ;;  %v333_v18 = vlaneseq  ;;  %vm344_vm1 = vcmask 130112  }
  0x36   : > { %v1198_v2 = vld [vmem:[%s266_s15 + $0x10] sm:$0xff]  ;;  %v301_v3 = vadd.f32 %v1196_v1, %v1194_v0  ;;  %v307_v4 = vmul.f32 %v1194_v0, %v1194_v0  ;;  %v308_v5 = vmul.f32 %v1196_v1, %v1196_v1  ;;  %v1206_v6 = vld [vmem:[%s266_s15 + $0x18] sm:$0xff]  ;;  %857 = vmatprep.subr.mxu0 %v1042_v12  ;;  %v362_v13 = vld [vmem:[%s1329_s6 + $0x8] sm:$0xff]  ;;  %864 = vmatprep.subr.mxu1 %v1042_v12  ;;  %vm359_vm2 = vcmask 1040384   ;;  %s296_s21 = scalar_lea.vmem [#allocation5], %s832_s11  ;;  %s845_s8 = sshll.u32 %s1108_s28, 9 }
  0x37   : > { %v309_v7 = vmul.f32 %v1198_v2, %v1198_v2  ;;  %v310_v8 = vmul.f32 %v1206_v6, %v1206_v6  ;;  %v304_v10 = vadd.f32 %v1206_v6, %v1198_v2  ;;  %858 = vmatpush3.msra.mxu0 %v362_v13  ;;  %v361_v14 = vld [vmem:[%s1329_s6] sm:$0xff]  ;;  %861 = vmatprep.mubr.msk.f32.mxu0 %vm1043_vm0, %v1042_v12  ;;  %v450_v15 = vld [vmem:[%s1325_s2 + $0x8] sm:$0xff]  ;;  %v334_v23 = vand.u32 127, %v333_v18  ;;  %s752_s9 = sshll.u32 %s296_s21, 4  ;;  %s1280_s18 = scalar_lea.hbm %s1330_s7, %s845_s8  ;;  %s1275_s9 = int_to_ptr.vmem [resolvable:$true] %s752_s9 }
  0x38   : > { %302 = vadd.xlane.f32.xlu0 %v301_v3  ;;  %v311_v9 = vadd.f32 %v308_v5, %v307_v4  ;;  %859 = vmatprep.subr.mxu0 %v1042_v12  ;;  %v449_v16 = vld [vmem:[%s1325_s2] sm:$0xff]  ;;  %v1236_v30 = vshrl.u32 %v333_v18, 7  ;;  %vm363_vm3 = vcmask 130048   ;;  %v448_v45 = vld [vmem:[%s1324_s1 + $0x8] sm:$0xff]  ;;  %vm615_vm4 = vcmask 1041408   ;;  %s739_s28 = scalar_lea.sflag [#allocation4], %s1184_s17 }
  0x39   : > { %v314_v11 = vadd.f32 %v310_v8, %v309_v7  ;;  %860 = vmatpush3.msra.mxu0 %v361_v14  ;;  %868 = vmatprep.mubr.msk.f32.mxu1 %vm1043_vm0, %v1042_v12  ;;  %v339_v28 = vadd.s32 4294967288, %v334_v23  ;;  %v447_v47 = vld [vmem:[%s1324_s1] sm:$0xff]  ;;  %vm611_vm5 = vcmask 15360   ;;  %s973_s15 = scalar_lea.vmem %s1275_s9, 512  ;;  %p1339_p12 = scmp.ne.s32.totalorder %s1335_s13, 0 }
  0x3a   : > { %312 = vadd.xlane.f32.xlu1 %v311_v9  ;;  %871 = vmatprep.subr.mxu0 %v1042_v12  ;;  %v337_v36 = vsub.s32 %v334_v23, %v1236_v30  ;;  %v609_v59 = vld [vmem:[%s1327_s4] sm:$0x3]  ;;  %v691_v60 = vsub.s32 0, %v1236_v30  ;;  %v706_v5 = vsub.s32 1, %v1236_v30  ;;  %p974_p11 = scmp.ne.s32.totalorder %s1275_s9, %s973_s15  ;;  %s1044_s12 = smov [#allocation5]  }
  0x3b   : > { %865 = vmatpush3.msra.mxu1 %v450_v15  ;;  %v342_v34 = vsub.s32 %v339_v28, %v1236_v30  ;;  %v610_v15 = vld [vmem:[%s1328_s5] sm:$0x1]  ;;  %s977_s20 = sshll.u32 %s1044_s12, 4  ;;  %s978_s20 = int_to_ptr.vmem [resolvable:$false] %s977_s20 }
  0x3c   : > { %305 = vadd.xlane.f32.xlu0 %v304_v10  ;;  %866 = vmatprep.subr.mxu1 %v1042_v12  ;;  %v606_v10 = vld [vmem:[%s1326_s3] sm:$0x1]  ;;  %p975_p13 = pnand %p974_p11, %p1339_p12  ;;  %s979_s22 = scalar_lea.vmem %s978_s20, 1024 }
  0x3d   : > { %867 = vmatpush3.msra.mxu1 %v449_v16  ;;  %p980_p5 = scmp.lt.s32.totalorder %s1275_s9, %s978_s20  ;;  %p981_p7 = scmp.lt.s32.totalorder %s979_s22, %s973_s15 }
  0x3e   : > { %315 = vadd.xlane.f32.xlu1 %v314_v11  ;;  %878 = vmatprep.subr.mxu1 %v1042_v12  ;;  %p976_p4 = pneg %p975_p13 }
  0x3f   : > { %p982_p8 = por %p981_p7, %p980_p5 }
  0x41   : > { %p983_p10 = pnand %p982_p8, %p976_p4 }
  0xc1   : > { %v303_v17 = vpop.xlane.xlu0 %302 }
  0xc2   : > { %v318_v19 = vmul.f32 0.00390625, %v303_v17 }
  0xc3   : > { %v313_v20 = vpop.xlane.xlu1 %312 }
  0xc4   : > { %v320_v21 = vmul.f32 %v318_v19, %v303_v17  ;;  %v338_v40 = vrot.slane %v318_v19, %v337_v36 }
  0xc5   : > { %v306_v22 = vpop.xlane.xlu0 %305 }
  0xc6   : > { %v322_v24 = vsub.f32 %v313_v20, %v320_v21  ;;  %v319_v25 = vmul.f32 0.00390625, %v306_v22 }
  0xc7   : > { %v316_v26 = vpop.xlane.xlu1 %315 }
  0xc8   : > { %v324_v27 = vmax.f32 %v322_v24, 0.0  ;;  %v321_v29 = vmul.f32 %v319_v25, %v306_v22  ;;  %v343_v38 = vrot.slane %v319_v25, %v342_v34 }
  0xca   : > { %v327_v31 = vmul.f32 0.003921569, %v324_v27  ;;  %v323_v32 = vsub.f32 %v316_v26, %v321_v29  ;;  %v345_v43 = vsel %vm344_vm1, %v343_v38, %v338_v40 }
  0xcc   : > { %v329_v33 = vadd.f32 1e-05, %v327_v31  ;;  %v325_v35 = vmax.f32 %v323_v32, 0.0 }
  0xce   : > { %935 = vlog2.f32 %v329_v33  ;;  %v328_v37 = vmul.f32 0.003921569, %v325_v35  ;;  %v352_v41 = vrot.slane %v329_v33, %v337_v36 }
  0xd0   : > { %v330_v39 = vadd.f32 1e-05, %v328_v37 }
  0xd2   : > { %v356_v42 = vrot.slane %v330_v39, %v342_v34  ;;  %937 = vlog2.f32 %v330_v39 }
  0xd4   : > { %v357_v44 = vsel %vm344_vm1, %v356_v42, %v352_v41 }
  0xd5   : > { %v360_v46 = vsel %vm359_vm2, %v345_v43, %v357_v44 }
  0xd6   : > { %862 = vmatmul.mubr.msk.f32.vlgmr.msra.gmra.mxu0 %vm363_vm3, %v360_v46 }
  0xd7   : > { %872 = vmatpush3.msra.mxu0 %v448_v45  ;;  %875 = vmatprep.mubr.msk.f32.mxu0 %vm1043_vm0, %v1042_v12 }
  0xd8   : > { %873 = vmatprep.subr.mxu0 %v1042_v12 }
  0xd9   : > { %874 = vmatpush3.msra.mxu0 %v447_v47 }
  0xda   : > { %876 = vmatmul.mubr.msk.f32.vlgmr.msra.gmra.mxu0 %vm363_vm3, %v345_v43 }
  0xdb   : > { %v936_v48 = vpop.eup %935 }
  0xdc   : > { %v439_v49 = vmul.f32 0.6931472, %v936_v48 }
  0xde   : > { %v443_v50 = vmul.f32 0.2, %v439_v49 }
  0xdf   : > { %v938_v51 = vpop.eup %937 }
  0xe0   : > { %v441_v52 = vmul.f32 0.6931472, %v938_v51  ;;  %939 = vtanh.f32 %v443_v50 }
  0xe2   : > { %v444_v53 = vmul.f32 0.2, %v441_v52 }
  0xe4   : > { %941 = vtanh.f32 %v444_v53 }
  0xed   : > { %v940_v54 = vpop.eup %939 }
  0xee   : > { %v456_v56 = vrot.slane %v940_v54, %v337_v36 }
  0xf1   : > { %v942_v55 = vpop.eup %941 }
  0xf2   : > { %v460_v57 = vrot.slane %v942_v55, %v342_v34 }
  0xf4   : > { %v461_v58 = vsel %vm344_vm1, %v460_v57, %v456_v56 }
  0xf5   : > { %869 = vmatmul.mubr.msk.f32.vlgmr.msra.gmra.mxu1 %vm363_vm3, %v461_v58 }
  0xf6   : > { %880 = vmatprep.mubr.msk.f32.mxu1 %vm1043_vm0, %v1042_v12  ;;  %879 = vmatpush3.msk.msra.mxu1 %vm615_vm4, %v609_v59 }
 0x196   : > { %v433_v61 = vpop.f32.mrf.mxu0 }
 0x197   : > { %943 = vrsqrt.f32 %v433_v61  ;;  %v692_v62 = vrot.slane %v433_v61, %v691_v60 }
 0x198   : > { %v863_v63 = vpop.f32.mrf.mxu0 }
 0x199   : > { %698 = vbcast.lane.b32.xlu1 %v692_v62, 264  ;;  %694 = vbcast.lane.b32.xlu0 %v692_v62, 256 }
 0x19a   : > { %v602_v3 = vpop.f32.mrf.mxu0 }
 0x19c   : > { %v877_v4 = vpop.f32.mrf.mxu0 }
 0x1a4   : > { %v944_v7 = vpop.eup %943 }
 0x1a5   : > { %v707_v8 = vrot.slane %v944_v7, %v706_v5 }
 0x1a7   : > { %709 = vbcast.lane.b32.xlu1 %v707_v8, 256 }
 0x1ab   : > { %713 = vbcast.lane.b32.xlu1 %v707_v8, 264 }
 0x1b5   : > { %v530_v9 = vpop.f32.mrf.mxu1 }
 0x1b6   : > { %v603_v11 = vadd.f32 %v602_v3, %v530_v9 }
 0x1b7   : > { %v870_v12 = vpop.f32.mrf.mxu1 }
 0x1b8   : > { %v607_v13 = vadd.f32 %v606_v10, %v603_v11 }
 0x1ba   : > { %v608_v14 = vmax.f32 %v607_v13, 0.0 }
 0x1bc   : > { %881 = vmatmul.mubr.msk.f32.vlgmr.msra.gmra.mxu1 %vm611_vm5, %v608_v14 }
 0x20b   : > { %v699_v20 = vpop.permute.xlu1 %698  ;;  %v695_v22 = vpop.permute.xlu0 %694 }
 0x20c   : > { %v702_v24 = vsub.f32 %v1198_v2, %v699_v20  ;;  %v703_v25 = vsub.f32 %v1206_v6, %v699_v20  ;;  %v700_v26 = vsub.f32 %v1194_v0, %v695_v22  ;;  %v701_v27 = vsub.f32 %v1196_v1, %v695_v22 }
 0x219   : > { %v710_v21 = vpop.permute.xlu1 %709 }
 0x21a   : > { %v715_v28 = vmul.f32 %v710_v21, %v700_v26  ;;  %v716_v29 = vmul.f32 %v710_v21, %v701_v27 }
 0x21d   : > { %v714_v23 = vpop.permute.xlu1 %713 }
 0x21e   : > { %v717_v30 = vmul.f32 %v714_v23, %v702_v24  ;;  %v718_v31 = vmul.f32 %v714_v23, %v703_v25 }
 0x27c   : > { %v685_v16 = vpop.f32.mrf.mxu1 }
 0x27d   : > { %v686_v17 = vadd.f32 %v685_v16, %v610_v15 }
 0x27e   : > { %v882_v18 = vpop.f32.mrf.mxu1 }
 0x27f   : > { %v722_v19 = vrot.slane %v686_v17, %v691_v60 }
 0x281   : > { %728 = vbcast.lane.b32.xlu1 %v722_v19, 264  ;;  %724 = vbcast.lane.b32.xlu0 %v722_v19, 256 }
 0x2f3   : > { %v729_v32 = vpop.permute.xlu1 %728  ;;  %v725_v33 = vpop.permute.xlu0 %724 }
 0x2f4   : > { %v732_v0 = vadd.f32 %v729_v32, %v717_v30  ;;  %v733_v1 = vadd.f32 %v729_v32, %v718_v31  ;;  %v730_v2 = vadd.f32 %v725_v33, %v715_v28  ;;  %v731_v6 = vadd.f32 %v725_v33, %v716_v29 }
 0x2f6   : > { %736 = vst [vmem:[%s296_s21 + $0x10] sm:$0xff] %v732_v0  ;;  %737 = vst [vmem:[%s296_s21 + $0x18] sm:$0xff] %v733_v1 }
 0x2f7   : > { %734 = vst [vmem:[%s296_s21] sm:$0xff] %v730_v2  ;;  %735 = vst [vmem:[%s296_s21 + $0x8] sm:$0xff] %v731_v6 }
 0x2f8   : > { %986 = shalt.err (!%p983_p10)
}
 0x2f9   : > { %s987_s23 = scalar_lea.hbm %s1280_s18, 512  ;;  %s991_s21 = scalar_lea.hbm %s1330_s7, 1024 }
 0x2fa   : > { %p988_p0 = scmp.ne.s32.totalorder %s1280_s18, %s987_s23  ;;  %p992_p1 = scmp.lt.s32.totalorder %s1280_s18, %s1330_s7 }
 0x2fb   : > { %p993_p3 = scmp.lt.s32.totalorder %s991_s21, %s987_s23 }
 0x2fc   : > { %p989_p2 = pnand %p988_p0, %p1339_p12 }
 0x2fd   : > { %p994_p6 = por %p993_p3, %p992_p1 }
 0x2fe   : > { %p990_p9 = pneg %p989_p2 }
 0x300   : > { %p995_p11 = pnand %p994_p6, %p990_p9 }
 0x302   : > { %998 = shalt.err (!%p995_p11)
}
 0x303   : > { %s1045_s16 = smov 256   ;;  %s1046_s15 = smov 16  }
 0x304   : > { %885 = dma.vmem_to_hbm [thread:$0]  (%p1339_p12), %s1275_s9, 512, %s1280_s18, %s739_s28, %s1045_s16, %s1045_s16, %s1046_s15  }
 0x305 PF: > { %s767_s12 = sand.u32 1, %s1025_s24   ;;  %p1340_p13 = scmp.ne.s32.totalorder %s1336_s14, 0 }
 0x306   : > { %p1341_p4 = scmp.ge.s32.totalorder %s1037_s27, 2  ;;  %s768_s20 = scalar_lea.sflag [#allocation4], %s767_s12 }
 0x308   : > { %p892_p5 = pnand %p1341_p4, %p1340_p13 }
 0x30a   : > { %p893_p7 = pneg %p892_p5 }
 0x30c   : > { %1020 = dma.done.wait (%p893_p7), %s768_s20, 512  }
 0x30d   : > { %1022 = vsyncadd (%p893_p7), %s768_s20, 4294966784  ;;  %p20_p8 = scmp.ge.s32.totalorder %s1112_s30, 4   ;;  %s1342_s24 = smov %s1029_s25 }
 0x30e   : > { %s1343_s25 = smov %s1033_s26  ;;  %s1344_s26 = smov %s1124_s10 }
 0x30f   : > { %s1345_s27 = smov %s1112_s30  ;;  %22 = sbr.rel (!%p20_p8) target bundleno = 5 (0x5), region = 93 }
 0x314   :  { %773 = vsyncpa [#allocation3], 1 }
 0x315   :  { %775 = vsyncpa [#allocation3 + $0x1], 1 }
 0x316   :  { %776 = vsyncpa [#allocation4], 1 }
 0x317   :  { %778 = vsyncpa [#allocation4 + $0x1], 1 }

</bundles_post_ra>
